<compile_context>
chip_gen: v7x
topology: tpu7x:2x2x1
jax: 0.10.0
libtpu: 0.0.40
codegen_flags: <defaults>
</compile_context>

<pallas_src>
import jax
import jax.numpy as jnp
from jax.experimental import pallas as pl
from jax.experimental.pallas import tpu as pltpu


def snake_kernel(alpha_ref, inv_ref, x_ref, o_ref):
    # alpha_ref / inv_ref: (tR, 1) f32 per-row parameters (inv precomputed in wrapper).
    # x_ref / o_ref: (tR, tT) in the I/O dtype.
    a = alpha_ref[...]
    inv = inv_ref[...]
    x = x_ref[...].astype(jnp.float32)

    s = jnp.sin(a * x)                       # EUP; (tR,1) params broadcast over lanes
    o_ref[...] = (x + inv * (s * s)).astype(o_ref.dtype)


def _tiles_for_device():
    """Per-generation default (row_tile, t_tile, is_v7x).  Best-effort detection."""
    kind = ""
    try:
        kind = jax.devices()[0].device_kind.lower()
    except Exception:
        pass
    if "v7" in kind or "7x" in kind:
        return 512, 2048, True      # ~4 MiB f32 / step; keep >=2 steps for 2 TCs
    if "v5" in kind:
        return 256, 1024, False     # ~1 MiB / step is already >~85% of roofline
    return 256, 2048, False         # v6e & unknown: ~2 MiB / step


def snake1d(x, alpha, *, t_tile=None, row_tile=None, donate_x=False):
    """Snake activation.  x: (B, C, T), alpha: (1, C, 1).  Returns (B, C, T).

    t_tile/row_tile default to a per-generation table.  Production configs
    should keep t_tile >= 512 (contiguous >=2 KiB DMA row chunks); the tiny
    tiles used in the self-test below are test-only.
    """
    B, C, T = x.shape
    assert alpha.shape == (1, C, 1)

    def_row, def_t, is_v7x = _tiles_for_device()
    itemsize = jnp.dtype(x.dtype).itemsize
    sub_unit = {4: 8, 2: 16, 1: 32}.get(itemsize, 8)   # sublanes per packed vreg

    if row_tile is None:
        row_tile = def_row
    if t_tile is None:
        t_tile = def_t
    assert t_tile % 128 == 0, "time tile must stay lane-dense (multiple of 128)"
    assert row_tile % sub_unit == 0, (
        f"row tile must be a multiple of {sub_unit} sublanes for dtype {x.dtype}")

    rows = B * C
    x2 = x.reshape(rows, T)
    # Per-row parameters (tiny (rows,1) arrays) -- the reciprocal is hoisted here
    # so the kernel body does no divide per time tile.
    alpha2 = jnp.broadcast_to(alpha.astype(jnp.float32), (B, C, 1)).reshape(rows, 1)
    inv2 = 1.0 / (alpha2 + 1e-9)

    # Block shapes: full dim when small (always legal), otherwise a dense tile.
    tR = rows if rows <= row_tile else row_tile
    tT = T if T <= t_tile else t_tile

    # v7x: the parallel grid axes shard across the two TensorCores; avoid a
    # (1,1) grid on medium inputs by splitting one axis into (at least) 2 steps.
    if is_v7x and pl.cdiv(rows, tR) * pl.cdiv(T, tT) < 2:
        if rows >= 2 * sub_unit:
            tR = ((rows + 1) // 2 + sub_unit - 1) // sub_unit * sub_unit
        elif T >= 256:
            tT = ((T + 1) // 2 + 127) // 128 * 128

    grid = (pl.cdiv(rows, tR), pl.cdiv(T, tT))

    n = rows * T
    cost = pl.CostEstimate(
        flops=4 * n,                                     # bandwidth-, not FLOP-, bound
        transcendentals=n,                               # one sin per element
        bytes_accessed=2 * n * itemsize + 2 * rows * 4,  # read x + write y + params
    )

    kwargs = {}
    if donate_x:
        kwargs["input_output_aliases"] = {2: 0}          # x2 -> output buffer

    out2 = pl.pallas_call(
        snake_kernel,
        out_shape=jax.ShapeDtypeStruct((rows, T), x.dtype),
        grid_spec=pltpu.PrefetchScalarGridSpec(
            num_scalar_prefetch=0,
            grid=grid,
            in_specs=[
                pl.BlockSpec((tR, 1), lambda r, t: (r, 0)),    # alpha column
                pl.BlockSpec((tR, 1), lambda r, t: (r, 0)),    # 1/(alpha+eps) column
                pl.BlockSpec((tR, tT), lambda r, t: (r, t)),   # x
            ],
            out_specs=pl.BlockSpec((tR, tT), lambda r, t: (r, t)),
        ),
        compiler_params=pltpu.CompilerParams(
            dimension_semantics=("parallel", "parallel"),
            # <= ~16-20 MiB double-buffered working set at the largest (v7x)
            # tile choice; 32 MiB scoped VMEM has headroom on every generation.
            vmem_limit_bytes=32 * 1024 * 1024,
        ),
        cost_estimate=cost,
        **kwargs,
    )(alpha2, inv2, x2)

    return out2.reshape(B, C, T)


def snake1d_ref(x, alpha):
    # Pure-JAX reference mirroring the torch.jit.script `snake`.
    return x + (1.0 / (alpha + 1e-9)) * jnp.sin(alpha * x) ** 2


if __name__ == "__main__":
    key = jax.random.PRNGKey(0)

    # --- small test matching the module's natural shapes -------------------
    B, C, T = 2, 4, 16
    alpha = jnp.ones((1, C, 1), dtype=jnp.float32)   # nn.Parameter(torch.ones(1, C, 1))
    x = jax.random.normal(key, (B, C, T), dtype=jnp.float32)

    out = snake1d(x, alpha)
    out = jax.block_until_ready(out)
    ref = snake1d_ref(x, alpha)
    assert out.shape == x.shape and out.dtype == x.dtype
    assert jnp.allclose(out, ref, atol=1e-5, rtol=1e-5), "mismatch vs reference (small)"

    # --- second test: tiled 2D grid path + small-alpha conditioning ---------
    # (tiny tiles are TEST-ONLY to force a multi-step grid; production keeps
    #  t_tile >= 512 for efficient contiguous DMA.)
    k1, k2 = jax.random.split(key)
    B2, C2, T2 = 2, 8, 384
    alpha_small = jnp.full((1, C2 // 2, 1), 1e-3, dtype=jnp.float32)
    alpha_big = 0.5 + jax.random.uniform(k1, (1, C2 - C2 // 2, 1), dtype=jnp.float32)
    alpha2 = jnp.concatenate([alpha_small, alpha_big], axis=1)
    x2 = jax.random.normal(k2, (B2, C2, T2), dtype=jnp.float32)

    out2 = snake1d(x2, alpha2, t_tile=128, row_tile=8)   # forces a (2, 3) grid
    out2 = jax.block_until_ready(out2)
    ref2 = snake1d_ref(x2, alpha2)
    assert out2.shape == x2.shape and out2.dtype == x2.dtype
    assert jnp.allclose(out2, ref2, atol=1e-5, rtol=1e-5), "mismatch vs reference (tiled)"

    print("KERNEL_OK")
</pallas_src>

<mosaic_0001>
module attributes {stable_mosaic.version = 11 : i64} {
  func.func @snake_kernel(%arg0: i32, %arg1: i32, %arg2: memref<8x1xf32, #tpu.memory_space<vmem>>, %arg3: memref<8x1xf32, #tpu.memory_space<vmem>>, %arg4: memref<8x16xf32, #tpu.memory_space<vmem>>, %arg5: memref<8x16xf32, #tpu.memory_space<vmem>>) attributes {dimension_semantics = [#tpu.dimension_semantics<parallel>, #tpu.dimension_semantics<parallel>], iteration_bounds = array<i64: 1, 1>, scalar_prefetch = 0 : i64, scratch_operands = 0 : i64, tpu.core_type = #tpu.core_type<tc>, window_params = [{transform_indices = @transform_0, window_bounds = array<i64: 8, 1>}, {transform_indices = @transform_1, window_bounds = array<i64: 8, 1>}, {transform_indices = @transform_2, window_bounds = array<i64: 8, 16>}, {transform_indices = @transform_3, window_bounds = array<i64: 8, 16>}]} {
    %c0 = arith.constant 0 : index
    %c0_0 = arith.constant 0 : index
    %0 = vector.load %arg2[%c0, %c0_0] : memref<8x1xf32, #tpu.memory_space<vmem>>, vector<8x1xf32>
    %c0_1 = arith.constant 0 : index
    %c0_2 = arith.constant 0 : index
    %1 = vector.load %arg3[%c0_1, %c0_2] : memref<8x1xf32, #tpu.memory_space<vmem>>, vector<8x1xf32>
    %c0_3 = arith.constant 0 : index
    %c0_4 = arith.constant 0 : index
    %2 = vector.load %arg4[%c0_3, %c0_4] : memref<8x16xf32, #tpu.memory_space<vmem>>, vector<8x16xf32>
    %3 = vector.broadcast %0 : vector<8x1xf32> to vector<8x16xf32>
    %4 = arith.mulf %3, %2 : vector<8x16xf32>
    %5 = math.sin %4 : vector<8x16xf32>
    %6 = arith.mulf %5, %5 : vector<8x16xf32>
    %7 = vector.broadcast %1 : vector<8x1xf32> to vector<8x16xf32>
    %8 = arith.mulf %7, %6 : vector<8x16xf32>
    %9 = arith.addf %2, %8 : vector<8x16xf32>
    %c0_5 = arith.constant 0 : index
    %c0_6 = arith.constant 0 : index
    %10 = vector.load %arg5[%c0_5, %c0_6] : memref<8x16xf32, #tpu.memory_space<vmem>>, vector<8x16xf32>
    tpu.vector_store %arg5[%c0_5, %c0_6], %9 {strides = array<i32>} : memref<8x16xf32, #tpu.memory_space<vmem>>, vector<8x16xf32>,
    return
  }
  func.func @transform_0(%arg0: i32, %arg1: i32) -> (i32, i32) {
    %c0_i32 = arith.constant 0 : i32
    %c0_i32_0 = arith.constant 0 : i32
    return %arg0, %c0_i32 : i32, i32
  }
  func.func @transform_1(%arg0: i32, %arg1: i32) -> (i32, i32) {
    %c0_i32 = arith.constant 0 : i32
    %c0_i32_0 = arith.constant 0 : i32
    return %arg0, %c0_i32 : i32, i32
  }
  func.func @transform_2(%arg0: i32, %arg1: i32) -> (i32, i32) {
    %c0_i32 = arith.constant 0 : i32
    return %arg0, %arg1 : i32, i32
  }
  func.func @transform_3(%arg0: i32, %arg1: i32) -> (i32, i32) {
    %c0_i32 = arith.constant 0 : i32
    return %arg0, %arg1 : i32, i32
  }
}

</mosaic_0001>

<bundles_post_ra>
// kernel: tpu_custom_call.1
= control target key start
LH: loop header
LB: loop body
LE: loop exit
PB: predicated region body
PF: predicated region fallthrough
CT: control target
= control target key end

     0   :  { %v197_v1 = vmov 0   ;;  %s271_s0 = inlined_call_operand.vmem [shape: f32[8,1], index: 0, kind: input, shape index: {}]   ;;  %s272_s1 = inlined_call_operand.vmem [shape: f32[8,1], index: 1, kind: input, shape index: {}]   ;;  %s273_s2 = inlined_call_operand.vmem [shape: f32[8,16], index: 2, kind: input, shape index: {}]   ;;  %s274_s3 = inlined_call_operand.hbm [shape: f32[8,16], index: 3, kind: output, shape index: {}]  }
   0x1   :  { %v15_v0 = vld [vmem:[%s271_s0] sm:$0xff]  ;;  %168 = vset.pattern.permute.xlu0 %v197_v1 }
   0x2   :  { %20 = vperm.xlu0 %168, %v15_v0  }
   0x3   :  { %8 = vsyncpa [#allocation3], 0  ;;  %v16_v2 = vld [vmem:[%s272_s1] sm:$0xff]  ;;  %v198_v16 = vmov 683565275   ;;  %s204_s0 = smov [#allocation2]  }
   0x4   :  { %v234_v3 = vld [vmem:[%s273_s2] sm:$0xff]  ;;  %v199_v18 = vmov 2475754826   ;;  %v200_v21 = vmov 2131351028   ;;  %s144_s1 = sshll.u32 %s204_s0, 4  ;;  %s145_s1 = int_to_ptr.vmem [resolvable:$true] %s144_s1 }
   0x5   :  { %v201_v24 = vmov 2102212464   ;;  %v202_v27 = vmov 920167782   ;;  %v203_v30 = vmov 1326507024   ;;  %p178_p1 = scmp.lt.s32.totalorder %s145_s1, %s145_s1 }
   0x6   :  { %131 = vperm.xlu0 %168, %v16_v2   ;;  %vm136_vm13 = vcmask 130048   ;;  %s173_s2 = scalar_lea.vmem %s145_s1, 128 }
   0x7   :  { %p174_p0 = scmp.ne.s32.totalorder %s145_s1, %s173_s2  ;;  %p179_p2 = scmp.lt.s32.totalorder %s173_s2, %s173_s2 }
   0x9   :  { %p180_p3 = por %p179_p2, %p178_p1 }
   0xb   :  { %p181_p4 = pnand %p180_p3, %p174_p0 }
  0x81   :  { %v21_v4 = vpop.permute.xlu0 %20 }
  0x82   :  { %v237_v5 = vmul.f32 %v21_v4, %v234_v3 }
  0x84   :  { %v27_v6 = vand.u32 2139095040, %v237_v5  ;;  %v24_v10 = vand.u32 2147483647, %v237_v5  ;;  %vm26_vm7 = vcmp.lt.s32.totalorder %v237_v5, 0  ;;  %vm116_vm12 = vweird.f32 %v237_v5 }
  0x86   :  { %v28_v7 = vshrl.u32 %v27_v6, 23  ;;  %v31_v13 = vand.u32 8388607, %v24_v10  ;;  %vm25_vm8 = vcmp.le.f32.partialorder %v24_v10, 0.7853982 }
  0x88   :  { %v152_v8 = vadd.s32 4294967169, %v28_v7  ;;  %v32_v32 = vor.u32 8388608, %v31_v13 }
  0x8a   :  { %v34_v9 = vadd.s32 1, %v152_v8  ;;  %v72_v46 = vshll.u32 %v32_v32, 8 }
  0x8c   :  { %vm35_vm0 = vcmp.gt.s32.totalorder %v34_v9, 0 }
  0x8d   :  { %v36_v11 = vsel %vm35_vm0, %v34_v9, 0 }
  0x8e   :  { %v38_v12 = vand.u32 31, %v36_v11  ;;  %v37_v15 = vshrl.u32 %v36_v11, 5 }
  0x90   :  { %v39_v14 = vsub.s32 32, %v38_v12  ;;  %v41_v17 = vshll.u32 %v198_v16, %v38_v12  ;;  %v44_v19 = vshll.u32 %v199_v18, %v38_v12  ;;  %v47_v23 = vshll.u32 %v200_v21, %v38_v12 }
  0x91   :  { %v50_v26 = vshll.u32 %v201_v24, %v38_v12  ;;  %v53_v29 = vshll.u32 %v202_v27, %v38_v12  ;;  %vm56_vm1 = vcmp.lt.s32.totalorder %v37_v15, 1  ;;  %vm59_vm2 = vcmp.lt.s32.totalorder %v37_v15, 4 }
  0x92   :  { %v42_v20 = vshrl.u32 %v199_v18, %v39_v14  ;;  %v45_v22 = vshrl.u32 %v200_v21, %v39_v14  ;;  %v48_v25 = vshrl.u32 %v201_v24, %v39_v14  ;;  %v51_v28 = vshrl.u32 %v202_v27, %v39_v14 }
  0x93   :  { %v54_v31 = vshrl.u32 %v203_v30, %v39_v14  ;;  %v40_v41 = vshrl.u32 %v198_v16, %v39_v14  ;;  %vm58_vm3 = vcmp.lt.s32.totalorder %v37_v15, 3  ;;  %vm57_vm4 = vcmp.lt.s32.totalorder %v37_v15, 2 }
  0x94   :  { %v43_v33 = vor.u32 %v42_v20, %v41_v17  ;;  %v46_v34 = vor.u32 %v45_v22, %v44_v19  ;;  %v49_v35 = vor.u32 %v48_v25, %v47_v23  ;;  %v52_v36 = vor.u32 %v51_v28, %v50_v26 }
  0x95   :  { %v55_v37 = vor.u32 %v54_v31, %v53_v29 }
  0x96   :  { %v61_v38 = vsel %vm59_vm2, %v49_v35, 2102212464  ;;  %v64_v39 = vsel %vm56_vm1, %v43_v33, %v46_v34  ;;  %v68_v40 = vsel %vm56_vm1, %v46_v34, %v49_v35  ;;  %v65_v42 = vsel %vm59_vm2, %v52_v36, 920167782 }
  0x97   :  { %v69_v43 = vsel %vm59_vm2, %v55_v37, 1326507024  ;;  %v66_v44 = vsel %vm58_vm3, %v49_v35, %v65_v42  ;;  %v60_v47 = vsel %vm56_vm1, %v40_v41, %v43_v33  ;;  %v62_v48 = vsel %vm58_vm3, %v46_v34, %v61_v38 }
  0x98   :  { %v70_v45 = vsel %vm58_vm3, %v52_v36, %v69_v43  ;;  %v67_v49 = vsel %vm57_vm4, %v64_v39, %v66_v44  ;;  %v63_v55 = vsel %vm57_vm4, %v60_v47, %v62_v48  ;;  %v132_v36 = vpop.permute.xlu0 %131 }
  0x99   :  { %v71_v50 = vsel %vm57_vm4, %v68_v40, %v70_v45  ;;  %v246_v53 = vmul.u32.u64.low %v72_v46, %v67_v49  ;;  %v247_v54 = vmul.u32.u64.high %v72_v46, %v67_v49, %v246_v53  ;;  %v79_v57 = vmul.u32 %v72_v46, %v63_v55 }
  0x9a   :  { %v243_v51 = vmul.u32.u64.low %v72_v46, %v71_v50  ;;  %v244_v52 = vmul.u32.u64.high %v72_v46, %v71_v50, %v243_v51 }
  0x9b   :  { %v82_v56 = vadd.s32 1, %v247_v54 }
  0x9c   :  { %vm81_vm5 = vc.u32 %v244_v52, %v246_v53  ;;  %v80_v7 = vadd.s32 %v246_v53, %v244_v52 }
  0x9d   :  { %v83_v58 = vsel %vm81_vm5, %v82_v56, %v247_v54 }
  0x9e   :  { %v84_v59 = vadd.s32 %v83_v58, %v79_v57 }
  0xa0   :  { %v85_v60 = vadd.s32 536870912, %v84_v59 }
  0xa2   :  { %v86_v61 = vshrl.u32 %v85_v60, 30 }
  0xa4   :  { %v87_v62 = vshll.u32 %v86_v61, 30  ;;  %v110_v20 = vsub.s32 4, %v86_v61 }
  0xa6   :  { %v88_v63 = vsub.s32 %v84_v59, %v87_v62  ;;  %v111_v23 = vsel %vm26_vm7, %v110_v20, %v86_v61 }
  0xa7   :  { %v113_v25 = vsel %vm25_vm8, 0, %v111_v23 }
  0xa8   :  { %v90_v0 = vsub.s32 0, %v88_v63  ;;  %v117_v26 = vadd.s32 3, %v113_v25 }
  0xaa   :  { %v153_v1 = vmin.u32 %v90_v0, %v88_v63  ;;  %v118_v27 = vand.u32 3, %v117_v26 }
  0xac   :  { %v92_v2 = vclz %v153_v1  ;;  %vm123_vm9 = vcmp.eq.s32.totalorder %v118_v27, 2  ;;  %vm120_vm10 = vcmp.eq.s32.totalorder %v118_v27, 0  ;;  %vm119_vm11 = vcmp.lt.s32.totalorder %v118_v27, 2 }
  0xae   :  { %v154_v4 = vadd.s32 4294967294, %v92_v2 }
  0xb0   :  { %vm155_vm6 = vcmp.lt.s32.totalorder %v154_v4, 0 }
  0xb1   :  { %v95_v6 = vsel %vm155_vm6, 0, %v154_v4 }
  0xb2   :  { %v96_v8 = vsub.s32 32, %v95_v6  ;;  %v100_v9 = vsub.s32 4294967266, %v95_v6  ;;  %v97_v11 = vshll.u32 %v88_v63, %v95_v6 }
  0xb4   :  { %v98_v12 = vshrl.u32 %v80_v7, %v96_v8  ;;  %v101_v13 = vadd.s32 127, %v100_v9 }
  0xb6   :  { %v99_v14 = vor.u32 %v98_v12, %v97_v11  ;;  %v102_v15 = vshll.u32 %v101_v13, 23 }
  0xb8   :  { %v103_v16 = vor.u32 4788187, %v102_v15  ;;  %v106_v18 = vcvt.s32.f32 %v99_v14 }
  0xba   :  { %v104_v17 = vand.u32 2147483647, %v103_v16 }
  0xbc   :  { %v107_v19 = vmul.f32 %v106_v18, %v104_v17 }
  0xbe   :  { %v108_v21 = vxor.u32 2147483648, %v107_v19 }
  0xc0   :  { %v109_v22 = vsel %vm26_vm7, %v108_v21, %v107_v19 }
  0xc1   :  { %v112_v24 = vsel %vm25_vm8, %v237_v5, %v109_v22 }
  0xc2   :  { %169 = vcosq.f32 %v112_v24 }
  0xc3   :  { %171 = vsinq.f32 %v112_v24 }
  0xcc   :  { %v170_v28 = vpop.eup %169 }
  0xcd   :  { %v172_v29 = vpop.eup %171  ;;  %v124_v30 = vxor.u32 2147483648, %v170_v28 }
  0xce   :  { %v121_v31 = vxor.u32 2147483648, %v172_v29 }
  0xcf   :  { %v125_v32 = vsel %vm123_vm9, %v124_v30, %v172_v29 }
  0xd0   :  { %v122_v33 = vsel %vm120_vm10, %v170_v28, %v121_v31 }
  0xd1   :  { %v126_v10 = vsel %vm119_vm11, %v122_v33, %v125_v32 }
  0xd2   :  { %v127_v34 = vsel %vm116_vm12, nan, %v126_v10 }
  0xd3   :  { %v128_v35 = vmul.f32 %v127_v34, %v127_v34 }
  0xd5   :  { %v134_v37 = vmul.f32 %v132_v36, %v128_v35 }
  0xd7   :  { %v135_v38 = vadd.f32 %v134_v37, %v234_v3 }
  0xd9   :  { %137 = vst.msk [vmem:[#allocation2] sm:$0xff] %vm136_vm13, %v135_v38 }
  0xda   :  { %184 = shalt.err (!%p181_p4)
}
  0xdb   :  { %s185_s20 = scalar_lea.hbm %s274_s3, 128 }
  0xdc   :  { %p186_p5 = scmp.ne.s32.totalorder %s274_s3, %s185_s20  ;;  %p189_p6 = scmp.lt.u32.totalorder %s185_s20, %s274_s3 }
  0xde   :  { %p191_p7 = pnand %p189_p6, %p186_p5 }
  0xe0   :  { %194 = shalt.err (!%p191_p7)
}
  0xe1   :  { %147 = dma.vmem_to_hbm [thread:$0]  %s145_s1, 128, %s274_s3, [#allocation3]  }
  0xe2   :  { %195 = dma.done.wait [#allocation3], 128  }
  0xe3   :  { %196 = vsyncadd [#allocation3], 4294967168 }
  0xe4   :  { %151 = vsyncpa [#allocation3], 1 }

</bundles_post_ra>
